<compile_context>
chip_gen: v6e
topology: v6e:2x2x1
jax: 0.10.0
libtpu: 0.0.40
codegen_flags: <defaults>
</compile_context>

<pallas_src>
import jax
import jax.numpy as jnp
from jax.experimental import pallas as pl
from jax.experimental.pallas import tpu as pltpu


# ---------------------------------------------------------------------------
# Zero-copy identity: the faithful (and fastest) implementation of Net.forward.
# ---------------------------------------------------------------------------
def net_forward(x: jax.Array) -> jax.Array:
    """Net.forward(x) == x. Pure identity: no data movement at all."""
    return x


# ---------------------------------------------------------------------------
# Materializing identity: copy x into a fresh HBM buffer via HBM->HBM DMA.
# ---------------------------------------------------------------------------
_MAX_DMA_CHUNKS = 4  # copies kept in flight on the DMA engines


def _row_chunks(rows: int, sublane: int, max_chunks: int):
    """Split [0, rows) into <= max_chunks contiguous chunks whose starts are
    multiples of `sublane`, so each DMA covers whole (sublane, 128) HBM tiles."""
    if rows <= sublane:
        return [(0, rows)]
    n = min(max_chunks, max(1, rows // sublane))
    base = -(-rows // n)                       # ceil(rows / n)
    base = -(-base // sublane) * sublane       # round up to sublane multiple
    chunks = []
    start = 0
    while start < rows:
        size = min(base, rows - start)
        chunks.append((start, size))
        start += size
    return chunks


def _make_dma_copy_kernel(chunks):
    """Kernel body: start all HBM->HBM chunk copies, then wait on all of them."""

    def kernel(x_hbm, o_hbm, sems):
        copies = []
        for idx, (start, size) in enumerate(chunks):
            if start == 0 and size == x_hbm.shape[0]:
                src, dst = x_hbm, o_hbm            # whole-array copy
            else:
                src = x_hbm.at[pl.ds(start, size)]
                dst = o_hbm.at[pl.ds(start, size)]
            cp = pltpu.make_async_copy(src, dst, sems.at[idx])
            cp.start()
            copies.append(cp)
        for cp in copies:                          # drain after all are in flight
            cp.wait()

    return kernel


def _dma_copy(x_view: jax.Array, chunks) -> jax.Array:
    return pl.pallas_call(
        _make_dma_copy_kernel(chunks),
        out_shape=jax.ShapeDtypeStruct(x_view.shape, x_view.dtype),
        in_specs=[pl.BlockSpec(memory_space=pl.ANY)],   # raw HBM ref, no auto-DMA
        out_specs=pl.BlockSpec(memory_space=pl.ANY),    # raw HBM ref, no auto-DMA
        scratch_shapes=[pltpu.SemaphoreType.DMA((len(chunks),))],
    )(x_view)


@jax.jit
def pallas_identity_copy(x: jax.Array) -> jax.Array:
    """Identity that materializes a fresh buffer using HBM->HBM DMAs only
    (no VMEM staging), so it runs at HBM bandwidth on v5e/v6e/v7x with a
    size-independent on-chip footprint."""
    n = x.size
    itemsize = jnp.dtype(x.dtype).itemsize
    sublane = max(8, 32 // itemsize)  # packed-sublane rows: 8 f32, 16 bf16, 32 int8

    if n % 128 == 0:
        # Lane-dense 2D view (free reshape); chunk the row axis so up to
        # _MAX_DMA_CHUNKS copies are in flight concurrently.
        cols = 128
        for c in (8192, 4096, 2048, 1024, 512, 256, 128):
            if n % c == 0:
                cols = c
                break
        rows = n // cols
        chunks = _row_chunks(rows, sublane, _MAX_DMA_CHUNKS)
        out2d = _dma_copy(x.reshape(rows, cols), chunks)
        return out2d.reshape(x.shape)

    # Element count not a multiple of 128: single whole-array DMA of the flat
    # view.  HBM->HBM DMAs never touch VMEM, so this cannot VMEM-OOM at any size.
    flat = x.reshape(n)
    out = _dma_copy(flat, [(0, n)])
    return out.reshape(x.shape)


if __name__ == "__main__":
    key = jax.random.PRNGKey(0)

    # Small NCHW input consistent with a generic module (batch=2, channels=4, 16x16).
    x = jax.random.normal(key, (2, 4, 16, 16), dtype=jnp.float32)

    # Zero-copy path: exact Net.forward semantics, no data movement.
    y = net_forward(x)
    jax.block_until_ready(y)
    assert y.shape == x.shape and y.dtype == x.dtype

    # Pallas HBM->HBM DMA copy path (128-divisible element count).
    y_copy = pallas_identity_copy(x)
    jax.block_until_ready(y_copy)
    assert y_copy.shape == x.shape and y_copy.dtype == x.dtype
    assert bool(jnp.array_equal(y_copy, x)), "identity copy kernel mismatch"

    # Exercise the non-128-divisible fallback as well (315 elements).
    x_odd = jax.random.normal(jax.random.PRNGKey(1), (5, 7, 9), dtype=jnp.float32)
    y_odd = pallas_identity_copy(x_odd)
    jax.block_until_ready(y_odd)
    assert bool(jnp.array_equal(y_odd, x_odd)), "odd-size identity copy mismatch"

    print("KERNEL_OK")
</pallas_src>

<mosaic_0001>
module attributes {stable_mosaic.version = 11 : i64} {
  func.func @kernel(%arg0: memref<1x2048xf32, #tpu.memory_space<any>>, %arg1: memref<1x2048xf32, #tpu.memory_space<any>>, %arg2: memref<1x!tpu.dma_semaphore, #tpu.memory_space<semaphore_mem>>) attributes {dimension_semantics = [], scalar_prefetch = 0 : i64, scratch_operands = 1 : i64, tpu.core_type = #tpu.core_type<tc>} {
    %c0_i32 = arith.constant 0 : i32
    %0 = tpu.memref_slice %arg2[%c0_i32] : memref<1x!tpu.dma_semaphore, #tpu.memory_space<semaphore_mem>> -> memref<1x!tpu.dma_semaphore, #tpu.memory_space<semaphore_mem>>
    %1 = tpu.memref_squeeze %0 : memref<1x!tpu.dma_semaphore, #tpu.memory_space<semaphore_mem>> -> memref<!tpu.dma_semaphore, #tpu.memory_space<semaphore_mem>>
    tpu.enqueue_dma source(%arg0 : memref<1x2048xf32, #tpu.memory_space<any>>) target(%arg1 : memref<1x2048xf32, #tpu.memory_space<any>>) target_semaphore(%1 : memref<!tpu.dma_semaphore, #tpu.memory_space<semaphore_mem>>)
    %c0_i32_0 = arith.constant 0 : i32
    %2 = tpu.memref_slice %arg2[%c0_i32_0] : memref<1x!tpu.dma_semaphore, #tpu.memory_space<semaphore_mem>> -> memref<1x!tpu.dma_semaphore, #tpu.memory_space<semaphore_mem>>
    %3 = tpu.memref_squeeze %2 : memref<1x!tpu.dma_semaphore, #tpu.memory_space<semaphore_mem>> -> memref<!tpu.dma_semaphore, #tpu.memory_space<semaphore_mem>>
    tpu.wait_dma2 semaphore(%3 : memref<!tpu.dma_semaphore, #tpu.memory_space<semaphore_mem>>) src(%arg0 : memref<1x2048xf32, #tpu.memory_space<any>>) dst(%arg1 : memref<1x2048xf32, #tpu.memory_space<any>>)
    return
  }
}

</mosaic_0001>

<bundles_post_ra>
// kernel: pallas_identity_copy.1
= control target key start
LH: loop header
LB: loop body
LE: loop exit
PB: predicated region body
PF: predicated region fallthrough
CT: control target
= control target key end

     0   :  { %s93_s0 = inlined_call_operand.vmem [shape: f32[1,2048], index: 0, kind: input, shape index: {}]   ;;  %s94_s1 = inlined_call_operand.vmem [shape: f32[1,2048], index: 1, kind: output, shape index: {}]  }
   0x1   :  { %v39_v0 = vld [vmem:[%s93_s0] sm:$0xff]  ;;  %v41_v1 = vld [vmem:[%s93_s0 + $0x8] sm:$0xff] }
   0x2   :  { %40 = vst [vmem:[%s94_s1] sm:$0xff] %v39_v0  ;;  %42 = vst [vmem:[%s94_s1 + $0x8] sm:$0xff] %v41_v1 }
   0x3   :  { %50 = vsyncadd [#allocation2], 256 }
   0x4   :  { %69 = dma.done.wait [#allocation2], 256 }
   0x5   :  { %70 = vsyncadd [#allocation2], 4294967040 }
   0x6   :  { %54 = vsyncmov [#allocation2] }
   0x9   :  { %s55_s14 = vpop.sfrf %54 }
   0xa   :  { %p68_p0 = scmp.ne.s32.totalorder %s55_s14, 0 }
   0xc   :  { %59 = shalt.err (%p68_p0)  }

</bundles_post_ra>
